<compile_context>
chip_gen: v6e
topology: v6e:2x2x1
jax: 0.10.0
libtpu: 0.0.40
codegen_flags: <defaults>
</compile_context>

<pallas_src>
import functools

import jax
import jax.numpy as jnp
from jax import lax
from jax.experimental import pallas as pl
from jax.experimental.pallas import tpu as pltpu


# ---------------------------------------------------------------------------
# Small helpers
# ---------------------------------------------------------------------------

def _relu(x):
  return jnp.maximum(x, 0.0)


def _round_up(x, m):
  return ((x + m - 1) // m) * m


def _choose_tile_n(n, k, c_pad, budget_bytes=40 * 1024 * 1024):
  """Largest lane/sublane friendly point tile that divides N and fits VMEM.

  Budget targets the smallest generation (v7x: 64 MiB physical VMEM):
  resident gather slab (single-buffered) + gathered rows + a few f32
  activation copies per tile.
  """
  resident = n * c_pad * 4
  for t in (512, 256, 128):
    if n % t == 0 and n > t:
      if resident + 6 * t * k * c_pad * 4 <= budget_bytes:
        return t
  # TODO(synk): ragged N (not a multiple of 128) needs a masked tail tile; a
  # single full-N tile is only viable for small point clouds.
  return n


# ---------------------------------------------------------------------------
# In-kernel building blocks
# ---------------------------------------------------------------------------

def _gather_neighbours(neigh_ref, slab_ref, gbuf, use_take, tile_n, k, c_pad):
  """Gather T*K neighbour rows from the VMEM-resident (N, c_pad) slab.

  Fast path: linear-cost `jnp.take` along the sublane axis (indices must be
  in [0, N), same contract as torch.gather in the reference module).
  Fallback: scalar-indexed row copies (neighbour table in SMEM, dynamic
  pl.ds row loads/stores) -- used when the gather pattern does not lower.
  """
  if use_take:
    flat_idx = neigh_ref[0].reshape(tile_n * k)
    return jnp.take(slab_ref[0], flat_idx, axis=0,
                    mode="promise_in_bounds")          # (T*K, c_pad)

  b = pl.program_id(0)
  base = pl.multiple_of(pl.program_id(1) * tile_n, tile_n)

  def point_body(t, carry):
    def nb_body(j, carry2):
      idx = neigh_ref[b, base + t, j]                  # scalar read from SMEM
      gbuf[pl.ds(t * k + j, 1), :] = slab_ref[0, pl.ds(idx, 1), :]
      return carry2
    return lax.fori_loop(0, k, nb_body, carry)

  lax.fori_loop(0, tile_n, point_body, 0)
  return gbuf[...]


def _rel_pos_mlp(xyz_q, neigh_xyz, w_q, w_n, w_d, b):
  """ReLU(lfa.mlp1(relative_pos_encoding)) with the 10-wide concat folded away.

  concat([dis, q - n, q, n], -1) @ W ==
      dis * W[0] + q @ (W[1:4] + W[4:7]) + n @ (W[7:10] - W[1:4])
  (w_q / w_n / w_d are the pre-combined slices, prepared in the wrapper).
  """
  t, k, _ = neigh_xyz.shape
  dh = w_q.shape[-1]
  q_term = jnp.dot(xyz_q, w_q, preferred_element_type=jnp.float32)   # (T, dh)
  n_term = jnp.dot(neigh_xyz.reshape(t * k, 3), w_n,
                   preferred_element_type=jnp.float32).reshape(t, k, dh)
  rel = xyz_q[:, None, :] - neigh_xyz                                 # (T,K,3)
  rel_dis = jnp.sqrt(jnp.sum(rel * rel, axis=-1, keepdims=True))      # (T,K,1)
  d_term = rel_dis * w_d.reshape(1, 1, dh)
  return _relu(q_term[:, None, :] + n_term + d_term + b.reshape(1, 1, dh))


def _att_pool_split(f_n, f_x, w_na, w_xa, w_nb, w_xb,
                    w_mlp_n, w_mlp_x, b_mlp):
  """Att_pooling over K of the virtual channel-concat [f_n, f_x].

  The concat is never materialised and the lane axis is never sliced: the fc
  weight is pre-split into four quadrants and the softmax (over K) is applied
  per half, which is exact because softmax is taken over K per channel.
  """
  t, k, dh = f_n.shape
  d_att = w_na.shape[-1]
  fn2 = f_n.reshape(t * k, dh).astype(jnp.bfloat16)
  fx2 = f_x.reshape(t * k, dh).astype(jnp.bfloat16)
  att_n = (jnp.dot(fn2, w_na, preferred_element_type=jnp.float32) +
           jnp.dot(fx2, w_xa, preferred_element_type=jnp.float32)
           ).reshape(t, k, d_att)
  att_x = (jnp.dot(fn2, w_nb, preferred_element_type=jnp.float32) +
           jnp.dot(fx2, w_xb, preferred_element_type=jnp.float32)
           ).reshape(t, k, d_att)

  def softmax_k(a):
    a = a - jnp.max(a, axis=1, keepdims=True)
    e = jnp.exp(a)
    return e / jnp.sum(e, axis=1, keepdims=True)

  agg_n = jnp.sum(f_n * softmax_k(att_n), axis=1)                      # (T,dh)
  agg_x = jnp.sum(f_x * softmax_k(att_x), axis=1)                      # (T,dh)
  out = (jnp.dot(agg_n.astype(jnp.bfloat16), w_mlp_n,
                 preferred_element_type=jnp.float32) +
         jnp.dot(agg_x.astype(jnp.bfloat16), w_mlp_x,
                 preferred_element_type=jnp.float32) + b_mlp)
  return _relu(out)


# ---------------------------------------------------------------------------
# Kernels
# ---------------------------------------------------------------------------

def _mlp1_kernel(xyz_ref, feat_ref, w_ref, b_ref, out_ref, *, d_half, c_pad):
  """Stage A: slab1 = [xyz | ReLU(BN(Conv1x1(feature))) | 0-pad]  (T, c_pad)."""
  x = feat_ref[0].astype(jnp.bfloat16)
  y = _relu(jnp.dot(x, w_ref[...], preferred_element_type=jnp.float32)
            + b_ref[...])
  parts = [xyz_ref[0], y]
  pad = c_pad - 3 - d_half
  if pad > 0:
    parts.append(jnp.zeros((y.shape[0], pad), jnp.float32))
  out_ref[0] = jnp.concatenate(parts, axis=-1)


def _lfa1_kernel(neigh_ref, slab_ref,
                 w1q_ref, w1n_ref, w1d_ref, b1_ref,
                 wfc_na_ref, wfc_xa_ref, wfc_nb_ref, wfc_xb_ref,
                 wpl_n_ref, wpl_x_ref, bpl_ref,
                 out_ref, *scratch,
                 use_take, tile_n, k, d_half, c_pad):
  """Stage B: Building_block first half + Att_pooling_1 -> slab2."""
  gbuf = scratch[0] if scratch else None
  g = _gather_neighbours(neigh_ref, slab_ref, gbuf, use_take,
                         tile_n, k, c_pad)                       # (T*K, c_pad)
  neigh_xyz = g[:, 0:3].reshape(tile_n, k, 3)
  f_neigh = g[:, 3:3 + d_half].reshape(tile_n, k, d_half)

  # Query xyz: slice out of the resident slab instead of a second input.
  start = pl.multiple_of(pl.program_id(1) * tile_n, tile_n)
  q_rows = slab_ref[0, pl.ds(start, tile_n), :]
  q_xyz = q_rows[:, 0:3]

  f_xyz = _rel_pos_mlp(q_xyz, neigh_xyz,
                       w1q_ref[...], w1n_ref[...], w1d_ref[...], b1_ref[...])
  f_agg = _att_pool_split(f_neigh, f_xyz,
                          wfc_na_ref[...], wfc_xa_ref[...],
                          wfc_nb_ref[...], wfc_xb_ref[...],
                          wpl_n_ref[...], wpl_x_ref[...], bpl_ref[...])

  parts = [q_xyz, f_agg]
  pad = c_pad - 3 - d_half
  if pad > 0:
    parts.append(jnp.zeros((tile_n, pad), jnp.float32))
  out_ref[0] = jnp.concatenate(parts, axis=-1)


def _lfa2_kernel(neigh_ref, feat_ref, slab_ref,
                 w1q_ref, w1n_ref, w1d_ref, b1_ref,
                 wlfa2_ref, blfa2_ref,
                 wfc_na_ref, wfc_xa_ref, wfc_nb_ref, wfc_xb_ref,
                 wpl_n_ref, wpl_x_ref, bpl_ref,
                 wmlp2_ref, bmlp2_ref, wsc_ref, bsc_ref,
                 out_ref, *scratch,
                 use_take, tile_n, k, d_half, c_pad):
  """Stage C: Att_pooling_2 + mlp2 + shortcut + LeakyReLU(0.2)."""
  gbuf = scratch[0] if scratch else None
  g = _gather_neighbours(neigh_ref, slab_ref, gbuf, use_take,
                         tile_n, k, c_pad)
  neigh_xyz = g[:, 0:3].reshape(tile_n, k, 3)
  f_neigh = g[:, 3:3 + d_half].reshape(tile_n, k, d_half)

  start = pl.multiple_of(pl.program_id(1) * tile_n, tile_n)
  q_rows = slab_ref[0, pl.ds(start, tile_n), :]
  q_xyz = q_rows[:, 0:3]

  # Recompute f_xyz here (cheap K*3*d_half matmul) instead of round-tripping
  # the (N, K, d_half) tensor through HBM between stage B and stage C.
  f_xyz = _rel_pos_mlp(q_xyz, neigh_xyz,
                       w1q_ref[...], w1n_ref[...], w1d_ref[...], b1_ref[...])
  f_xyz2 = _relu(
      jnp.dot(f_xyz.reshape(tile_n * k, d_half).astype(jnp.bfloat16),
              wlfa2_ref[...], preferred_element_type=jnp.float32)
      + blfa2_ref[...]).reshape(tile_n, k, d_half)

  f_agg2 = _att_pool_split(f_neigh, f_xyz2,
                           wfc_na_ref[...], wfc_xa_ref[...],
                           wfc_nb_ref[...], wfc_xb_ref[...],
                           wpl_n_ref[...], wpl_x_ref[...], bpl_ref[...])

  # mlp2 (no activation) + shortcut (no activation) + LeakyReLU(0.2)
  f_out = jnp.dot(f_agg2.astype(jnp.bfloat16), wmlp2_ref[...],
                  preferred_element_type=jnp.float32) + bmlp2_ref[...]
  sc = jnp.dot(feat_ref[0].astype(jnp.bfloat16), wsc_ref[...],
               preferred_element_type=jnp.float32) + bsc_ref[...]
  y = f_out + sc
  out_ref[0] = jnp.where(y >= 0.0, y, 0.2 * y).astype(out_ref.dtype)


# ---------------------------------------------------------------------------
# Parameters (conv weights + folded eval-mode BatchNorm)
# ---------------------------------------------------------------------------

def _fold_bn(w, gamma, beta, mean, var, eps=1e-5):
  scale = gamma / jnp.sqrt(var + eps)
  return w * scale[None, :], (beta - mean * scale)[None, :]


def init_params(key, d_in, d_out):
  """Deterministic synthetic parameters (conv weights + folded eval-mode BN)."""
  d_half = d_out // 2
  ks = iter(jax.random.split(key, 64))

  def conv_w(ci, co):
    return jax.random.normal(next(ks), (ci, co), jnp.float32) / jnp.sqrt(float(ci))

  def bn(c):
    gamma = jax.random.uniform(next(ks), (c,), jnp.float32, 0.5, 1.5)
    beta = jax.random.normal(next(ks), (c,), jnp.float32) * 0.1
    mean = jax.random.normal(next(ks), (c,), jnp.float32) * 0.1
    var = jax.random.uniform(next(ks), (c,), jnp.float32, 0.5, 1.5)
    return gamma, beta, mean, var

  def conv_bn(ci, co):
    return _fold_bn(conv_w(ci, co), *bn(co))

  w_mlp1, b_mlp1 = conv_bn(d_in, d_half)          # Dilated_res_block.mlp1
  w_lfa1, b_lfa1 = conv_bn(10, d_half)            # Building_block.mlp1
  w_att1_fc = conv_w(d_out, d_out)                # Att_pooling_1.fc (no bias/bn)
  w_att1_mlp, b_att1_mlp = conv_bn(d_out, d_half) # Att_pooling_1.mlp
  w_lfa2, b_lfa2 = conv_bn(d_half, d_half)        # Building_block.mlp2
  w_att2_fc = conv_w(d_out, d_out)                # Att_pooling_2.fc
  w_att2_mlp, b_att2_mlp = conv_bn(d_out, d_out)  # Att_pooling_2.mlp
  w_mlp2, b_mlp2 = conv_bn(d_out, 2 * d_out)      # Dilated_res_block.mlp2
  w_sc, b_sc = conv_bn(d_in, 2 * d_out)           # Dilated_res_block.shortcut
  return [w_mlp1, b_mlp1, w_lfa1, b_lfa1, w_att1_fc, w_att1_mlp, b_att1_mlp,
          w_lfa2, b_lfa2, w_att2_fc, w_att2_mlp, b_att2_mlp,
          w_mlp2, b_mlp2, w_sc, b_sc]


# ---------------------------------------------------------------------------
# pallas_call plumbing
# ---------------------------------------------------------------------------

def _forward(feat, xyz, neigh, weights, dims, use_take):
  (B, N, K, d_in, d_half, d_out, d_out2, c_pad, T, n_tiles) = dims
  (w_mlp1, b_mlp1,
   w1_q, w1_n, w1_d, b_lfa1,
   (fc1_na, fc1_xa, fc1_nb, fc1_xb), w_pool1_n, w_pool1_x, b_pool1,
   w_lfa2, b_lfa2,
   (fc2_na, fc2_xa, fc2_nb, fc2_xb), w_pool2_n, w_pool2_x, b_pool2,
   w_mlp2, b_mlp2, w_sc, b_sc) = weights

  grid = (B, n_tiles)
  # Single-buffer the resident gather slab and the weights (they never change
  # along the tile axis) to free VMEM headroom, especially on v7x (64 MiB).
  pipe = dict(pipeline_mode=pl.Buffered(1)) if use_take else {}

  def tiled(c):
    return pl.BlockSpec((1, T, c), lambda b, t: (b, t, 0))

  def resident(c):
    # Index constant along the point-tile axis -> kept VMEM resident.
    return pl.BlockSpec((1, N, c), lambda b, t: (b, 0, 0), **pipe)

  def wspec(shape):
    nd = len(shape)
    return pl.BlockSpec(shape, lambda b, t, _nd=nd: (0,) * _nd, **pipe)

  if use_take:
    neigh_spec = pl.BlockSpec((1, T, K), lambda b, t: (b, t, 0))
    gather_scratch = []
  else:
    # Fallback: whole neighbour table in SMEM + scalar row-copy gather.
    # TODO(synk): does not scale to very large B*N*K (SMEM is ~1 MiB).
    neigh_spec = pl.BlockSpec(memory_space=pltpu.MemorySpace.SMEM)
    gather_scratch = [pltpu.VMEM((T * K, c_pad), jnp.float32)]

  # "arbitrary" on the tile axis so megacore (v7x) splits over batches only:
  # each TensorCore then streams its resident slab exactly once per batch.
  cp_stream = pltpu.CompilerParams(
      dimension_semantics=("parallel", "parallel"),
      vmem_limit_bytes=64 * 1024 * 1024)
  cp_resident = pltpu.CompilerParams(
      dimension_semantics=("parallel", "arbitrary"),
      vmem_limit_bytes=64 * 1024 * 1024)

  # ---- stage A: slab1 = [xyz | ReLU(BN(Conv1x1(feature))) | pad] -----------
  slab1 = pl.pallas_call(
      functools.partial(_mlp1_kernel, d_half=d_half, c_pad=c_pad),
      out_shape=jax.ShapeDtypeStruct((B, N, c_pad), jnp.float32),
      grid_spec=pltpu.PrefetchScalarGridSpec(
          num_scalar_prefetch=0, grid=grid,
          in_specs=[tiled(3), tiled(d_in),
                    wspec((d_in, d_half)), wspec((1, d_half))],
          out_specs=tiled(c_pad)),
      compiler_params=cp_stream,
      cost_estimate=pl.CostEstimate(
          flops=2 * B * N * d_in * d_half, transcendentals=0,
          bytes_accessed=4 * B * N * (3 + d_in + c_pad)),
  )(xyz, feat, w_mlp1, b_mlp1)

  # ---- stage B: rel-pos encoding + Att_pooling_1 -> slab2 = [xyz | f_agg] ---
  slab2 = pl.pallas_call(
      functools.partial(_lfa1_kernel, use_take=use_take, tile_n=T, k=K,
                        d_half=d_half, c_pad=c_pad),
      out_shape=jax.ShapeDtypeStruct((B, N, c_pad), jnp.float32),
      grid_spec=pltpu.PrefetchScalarGridSpec(
          num_scalar_prefetch=0, grid=grid,
          in_specs=[neigh_spec, resident(c_pad),
                    wspec((3, d_half)), wspec((3, d_half)),
                    wspec((1, d_half)), wspec((1, d_half)),
                    wspec((d_half, d_half)), wspec((d_half, d_half)),
                    wspec((d_half, d_half)), wspec((d_half, d_half)),
                    wspec((d_half, d_half)), wspec((d_half, d_half)),
                    wspec((1, d_half))],
          out_specs=tiled(c_pad),
          scratch_shapes=gather_scratch),
      compiler_params=cp_resident,
      cost_estimate=pl.CostEstimate(
          flops=2 * B * N * (K * 3 * d_half + 3 * d_half
                             + 4 * K * d_half * d_half
                             + 2 * K * d_half + 2 * d_half * d_half),
          transcendentals=B * N * K * (1 + 2 * d_half),
          bytes_accessed=4 * B * N * (K + 2 * c_pad)),
  )(neigh, slab1,
    w1_q, w1_n, w1_d, b_lfa1,
    fc1_na, fc1_xa, fc1_nb, fc1_xb,
    w_pool1_n, w_pool1_x, b_pool1)

  # ---- stage C: Att_pooling_2 + mlp2 + shortcut + LeakyReLU -----------------
  out = pl.pallas_call(
      functools.partial(_lfa2_kernel, use_take=use_take, tile_n=T, k=K,
                        d_half=d_half, c_pad=c_pad),
      out_shape=jax.ShapeDtypeStruct((B, N, d_out2), jnp.float32),
      grid_spec=pltpu.PrefetchScalarGridSpec(
          num_scalar_prefetch=0, grid=grid,
          in_specs=[neigh_spec, tiled(d_in), resident(c_pad),
                    wspec((3, d_half)), wspec((3, d_half)),
                    wspec((1, d_half)), wspec((1, d_half)),
                    wspec((d_half, d_half)), wspec((1, d_half)),
                    wspec((d_half, d_half)), wspec((d_half, d_half)),
                    wspec((d_half, d_half)), wspec((d_half, d_half)),
                    wspec((d_half, d_out)), wspec((d_half, d_out)),
                    wspec((1, d_out)),
                    wspec((d_out, d_out2)), wspec((1, d_out2)),
                    wspec((d_in, d_out2)), wspec((1, d_out2))],
          out_specs=tiled(d_out2),
          scratch_shapes=gather_scratch),
      compiler_params=cp_resident,
      cost_estimate=pl.CostEstimate(
          flops=2 * B * N * (K * 3 * d_half + 3 * d_half
                             + 5 * K * d_half * d_half
                             + 2 * K * d_half + 2 * d_half * d_out
                             + d_out * d_out2 + d_in * d_out2),
          transcendentals=B * N * K * (1 + 2 * d_half),
          bytes_accessed=4 * B * N * (K + d_in + c_pad + d_out2)),
  )(neigh, feat, slab2,
    w1_q, w1_n, w1_d, b_lfa1,
    w_lfa2, b_lfa2,
    fc2_na, fc2_xa, fc2_nb, fc2_xb,
    w_pool2_n, w_pool2_x, b_pool2,
    w_mlp2, b_mlp2, w_sc, b_sc)

  return out


def dilated_res_block(feature_nchw, xyz, neigh_idx, params, d_out,
                      use_take=None):
  """feature_nchw: (B, d_in, N, 1); xyz: (B, N, 3); neigh_idx: (B, N, K) int.

  Returns (B, 2*d_out, N, 1), matching the PyTorch module output layout.
  """
  B, d_in, N, _ = feature_nchw.shape
  K = neigh_idx.shape[-1]
  d_half = d_out // 2
  d_out2 = 2 * d_out
  c_pad = max(128, _round_up(3 + d_half, 128))
  T = _choose_tile_n(N, K, c_pad)
  assert N % T == 0
  n_tiles = N // T
  dims = (B, N, K, d_in, d_half, d_out, d_out2, c_pad, T, n_tiles)

  # TODO(synk): fold these NCHW<->NHWC transposes into the kernels (read the
  # feature as (1, d_in, T) blocks, write the output as (1, d_out2, T) blocks
  # with an in-kernel transpose) to drop two extra XLA HBM passes.
  feat = jnp.transpose(feature_nchw[..., 0], (0, 2, 1)).astype(jnp.float32)
  xyz = xyz.astype(jnp.float32)
  neigh = neigh_idx.astype(jnp.int32)

  (w_mlp1, b_mlp1, w_lfa1, b_lfa1, w_att1_fc, w_att1_mlp, b_att1_mlp,
   w_lfa2, b_lfa2, w_att2_fc, w_att2_mlp, b_att2_mlp,
   w_mlp2, b_mlp2, w_sc, b_sc) = params

  bf16 = lambda a: a.astype(jnp.bfloat16)

  # Fold the 10-wide relative-position-encoding concat into combined slices.
  w1_d = w_lfa1[0:1]                    # multiplies relative_dis
  w1_q = w_lfa1[1:4] + w_lfa1[4:7]      # multiplies the query xyz
  w1_n = w_lfa1[7:10] - w_lfa1[1:4]     # multiplies the gathered neighbour xyz

  def fc_quadrants(w):
    # channel-concat [f_neigh, f_xyz] -> att logits; split along both input
    # and output channels so the softmax halves stay lane-aligned.
    h = w.shape[0] // 2
    return (bf16(w[:h, :h]), bf16(w[h:, :h]), bf16(w[:h, h:]), bf16(w[h:, h:]))

  def row_halves(w):
    h = w.shape[0] // 2
    return bf16(w[:h]), bf16(w[h:])

  fc1 = fc_quadrants(w_att1_fc)
  w_pool1_n, w_pool1_x = row_halves(w_att1_mlp)
  fc2 = fc_quadrants(w_att2_fc)
  w_pool2_n, w_pool2_x = row_halves(w_att2_mlp)

  weights = (bf16(w_mlp1), b_mlp1,
             w1_q, w1_n, w1_d, b_lfa1,
             fc1, w_pool1_n, w_pool1_x, b_att1_mlp,
             bf16(w_lfa2), b_lfa2,
             fc2, w_pool2_n, w_pool2_x, b_att2_mlp,
             bf16(w_mlp2), b_mlp2, bf16(w_sc), b_sc)

  if use_take is None:
    try:
      out = jax.block_until_ready(
          _forward(feat, xyz, neigh, weights, dims, use_take=True))
    except Exception:   # pragma: no cover - jnp.take gather did not lower
      out = _forward(feat, xyz, neigh, weights, dims, use_take=False)
  else:
    out = _forward(feat, xyz, neigh, weights, dims, use_take=use_take)

  # back to PyTorch NCHW: (B, 2*d_out, N, 1)
  return jnp.transpose(out, (0, 2, 1))[..., None]


# ---------------------------------------------------------------------------
# Pure-JAX f32 reference (mirrors the PyTorch module) for validation
# ---------------------------------------------------------------------------

def _reference(feature_nchw, xyz, neigh_idx, params, d_out):
  (w_mlp1, b_mlp1, w_lfa1, b_lfa1, w_att1_fc, w_att1_mlp, b_att1_mlp,
   w_lfa2, b_lfa2, w_att2_fc, w_att2_mlp, b_att2_mlp,
   w_mlp2, b_mlp2, w_sc, b_sc) = params
  feat = jnp.transpose(feature_nchw[..., 0], (0, 2, 1))

  def gather(pc, idx):                  # (B,N,C),(B,N,K) -> (B,N,K,C)
    return jax.vmap(lambda p, i: p[i])(pc, idx)

  relu = lambda x: jnp.maximum(x, 0.0)

  f_pc = relu(feat @ w_mlp1 + b_mlp1)

  neigh_xyz = gather(xyz, neigh_idx)
  xyz_tile = jnp.broadcast_to(xyz[:, :, None, :], neigh_xyz.shape)
  rel = xyz_tile - neigh_xyz
  dis = jnp.sqrt(jnp.sum(rel * rel, axis=-1, keepdims=True))
  f_rel = jnp.concatenate([dis, rel, xyz_tile, neigh_xyz], axis=-1)
  f_xyz = relu(f_rel @ w_lfa1 + b_lfa1)

  def att_pool(f_cat, w_fc, w_mlp, b_mlp):
    att = f_cat @ w_fc
    sc = jax.nn.softmax(att, axis=2)
    agg = jnp.sum(f_cat * sc, axis=2)
    return relu(agg @ w_mlp + b_mlp)

  f_cat = jnp.concatenate([gather(f_pc, neigh_idx), f_xyz], axis=-1)
  f_pc_agg = att_pool(f_cat, w_att1_fc, w_att1_mlp, b_att1_mlp)

  f_xyz2 = relu(f_xyz @ w_lfa2 + b_lfa2)
  f_cat2 = jnp.concatenate([gather(f_pc_agg, neigh_idx), f_xyz2], axis=-1)
  f_agg2 = att_pool(f_cat2, w_att2_fc, w_att2_mlp, b_att2_mlp)

  y = (f_agg2 @ w_mlp2 + b_mlp2) + (feat @ w_sc + b_sc)
  y = jnp.where(y >= 0, y, 0.2 * y)
  return jnp.transpose(y, (0, 2, 1))[..., None]


if __name__ == "__main__":
  key = jax.random.PRNGKey(0)
  k_feat, k_xyz, k_idx, k_par = jax.random.split(key, 4)

  B, N, K = 2, 16, 8
  d_in, d_out = 4, 8

  feature = jax.random.normal(k_feat, (B, d_in, N, 1), jnp.float32)
  xyz = jax.random.normal(k_xyz, (B, N, 3), jnp.float32)
  neigh_idx = jax.random.randint(k_idx, (B, N, K), 0, N, jnp.int32)
  params = init_params(k_par, d_in, d_out)

  out = dilated_res_block(feature, xyz, neigh_idx, params, d_out)
  out = jax.block_until_ready(out)
  assert out.shape == (B, 2 * d_out, N, 1), out.shape
  assert bool(jnp.all(jnp.isfinite(out)))

  # Validate against a pure-JAX f32 reference.  Softmax is exact (no approx
  # reciprocal); remaining error comes from bf16 MXU matmuls only.
  ref = _reference(feature, xyz, neigh_idx, params, d_out)
  err = float(jnp.max(jnp.abs(out - ref)) / (jnp.max(jnp.abs(ref)) + 1e-6))
  assert err < 0.08, f"max normalized error too large: {err}"

  print("KERNEL_OK")
</pallas_src>

<mosaic_0001>
module attributes {stable_mosaic.version = 11 : i64} {
  func.func @_mlp1_kernel(%arg0: i32, %arg1: i32, %arg2: memref<1x16x3xf32, #tpu.memory_space<vmem>>, %arg3: memref<1x16x4xf32, #tpu.memory_space<vmem>>, %arg4: memref<4x4xbf16, #tpu.memory_space<vmem>>, %arg5: memref<1x4xf32, #tpu.memory_space<vmem>>, %arg6: memref<1x16x128xf32, #tpu.memory_space<vmem>>) attributes {dimension_semantics = [#tpu.dimension_semantics<parallel>, #tpu.dimension_semantics<parallel>], iteration_bounds = array<i64: 2, 1>, scalar_prefetch = 0 : i64, scratch_operands = 0 : i64, tpu.core_type = #tpu.core_type<tc>, window_params = [{transform_indices = @transform_0, window_bounds = array<i64: 1, 16, 3>}, {transform_indices = @transform_1, window_bounds = array<i64: 1, 16, 4>}, {pipeline_mode = #tpu.pipeline_mode<synchronous>, transform_indices = @transform_2, window_bounds = array<i64: 4, 4>}, {pipeline_mode = #tpu.pipeline_mode<synchronous>, transform_indices = @transform_3, window_bounds = array<i64: 1, 4>}, {transform_indices = @transform_4, window_bounds = array<i64: 1, 16, 128>}]} {
    %c0 = arith.constant 0 : index
    %c0_0 = arith.constant 0 : index
    %c0_1 = arith.constant 0 : index
    %0 = vector.load %arg3[%c0, %c0_0, %c0_1] : memref<1x16x4xf32, #tpu.memory_space<vmem>>, vector<1x16x4xf32>
    %1 = vector.shape_cast %0 : vector<1x16x4xf32> to vector<16x4xf32>
    %2 = arith.truncf %1 : vector<16x4xf32> to vector<16x4xbf16>
    %c0_2 = arith.constant 0 : index
    %c0_3 = arith.constant 0 : index
    %3 = vector.load %arg4[%c0_2, %c0_3] : memref<4x4xbf16, #tpu.memory_space<vmem>>, vector<4x4xbf16>
    %cst = arith.constant dense<0.000000e+00> : vector<16x4xf32>
    %4 = tpu.matmul %2, %3, %cst {dimension_numbers = #tpu.dot_dimension_numbers<[1], [0], [0], [1], [0, 0, 1, 1], [], []>} : vector<16x4xbf16>, vector<4x4xbf16>, vector<16x4xf32> -> vector<16x4xf32>
    %c0_4 = arith.constant 0 : index
    %c0_5 = arith.constant 0 : index
    %5 = vector.load %arg5[%c0_4, %c0_5] : memref<1x4xf32, #tpu.memory_space<vmem>>, vector<1x4xf32>
    %6 = vector.broadcast %5 : vector<1x4xf32> to vector<16x4xf32>
    %7 = arith.addf %4, %6 : vector<16x4xf32>
    %cst_6 = arith.constant 0.000000e+00 : f32
    %8 = vector.broadcast %cst_6 : f32 to vector<16x4xf32>
    %9 = arith.maximumf %7, %8 : vector<16x4xf32>
    %c0_7 = arith.constant 0 : index
    %c0_8 = arith.constant 0 : index
    %c0_9 = arith.constant 0 : index
    %10 = vector.load %arg2[%c0_7, %c0_8, %c0_9] : memref<1x16x3xf32, #tpu.memory_space<vmem>>, vector<1x16x3xf32>
    %11 = vector.shape_cast %10 : vector<1x16x3xf32> to vector<16x3xf32>
    %cst_10 = arith.constant 0.000000e+00 : f32
    %12 = vector.broadcast %cst_10 : f32 to vector<16x121xf32>
    %13 = tpu.concatenate %11, %9, %12 in 1 : vector<16x3xf32>, vector<16x4xf32>, vector<16x121xf32> -> vector<16x128xf32>
    %c0_11 = arith.constant 0 : index
    %c0_12 = arith.constant 0 : index
    %c0_13 = arith.constant 0 : index
    %14 = vector.load %arg6[%c0_11, %c0_12, %c0_13] : memref<1x16x128xf32, #tpu.memory_space<vmem>>, vector<1x16x128xf32>
    %15 = vector.shape_cast %14 : vector<1x16x128xf32> to vector<16x128xf32>
    %16 = vector.shape_cast %13 : vector<16x128xf32> to vector<1x16x128xf32>
    tpu.vector_store %arg6[%c0_11, %c0_12, %c0_13], %16 {strides = array<i32>} : memref<1x16x128xf32, #tpu.memory_space<vmem>>, vector<1x16x128xf32>,
    return
  }
  func.func @transform_0(%arg0: i32, %arg1: i32) -> (i32, i32, i32) {
    %c0_i32 = arith.constant 0 : i32
    %c0_i32_0 = arith.constant 0 : i32
    return %arg0, %arg1, %c0_i32 : i32, i32, i32
  }
  func.func @transform_1(%arg0: i32, %arg1: i32) -> (i32, i32, i32) {
    %c0_i32 = arith.constant 0 : i32
    %c0_i32_0 = arith.constant 0 : i32
    return %arg0, %arg1, %c0_i32 : i32, i32, i32
  }
  func.func @transform_2(%arg0: i32, %arg1: i32) -> (i32, i32) {
    %c0_i32 = arith.constant 0 : i32
    %c0_i32_0 = arith.constant 0 : i32
    %c0_i32_1 = arith.constant 0 : i32
    return %c0_i32, %c0_i32_0 : i32, i32
  }
  func.func @transform_3(%arg0: i32, %arg1: i32) -> (i32, i32) {
    %c0_i32 = arith.constant 0 : i32
    %c0_i32_0 = arith.constant 0 : i32
    %c0_i32_1 = arith.constant 0 : i32
    return %c0_i32, %c0_i32_0 : i32, i32
  }
  func.func @transform_4(%arg0: i32, %arg1: i32) -> (i32, i32, i32) {
    %c0_i32 = arith.constant 0 : i32
    %c0_i32_0 = arith.constant 0 : i32
    return %arg0, %arg1, %c0_i32 : i32, i32, i32
  }
}

module attributes {stable_mosaic.version = 11 : i64} {
  func.func @_mlp1_kernel(%arg0: i32, %arg1: i32, %arg2: memref<1x16x3xf32, #tpu.memory_space<vmem>>, %arg3: memref<1x16x4xf32, #tpu.memory_space<vmem>>, %arg4: memref<4x4xbf16, #tpu.memory_space<vmem>>, %arg5: memref<1x4xf32, #tpu.memory_space<vmem>>, %arg6: memref<1x16x128xf32, #tpu.memory_space<vmem>>) attributes {dimension_semantics = [#tpu.dimension_semantics<parallel>, #tpu.dimension_semantics<parallel>], iteration_bounds = array<i64: 2, 1>, scalar_prefetch = 0 : i64, scratch_operands = 0 : i64, tpu.core_type = #tpu.core_type<tc>, window_params = [{transform_indices = @transform_0, window_bounds = array<i64: 1, 16, 3>}, {transform_indices = @transform_1, window_bounds = array<i64: 1, 16, 4>}, {pipeline_mode = #tpu.pipeline_mode<synchronous>, transform_indices = @transform_2, window_bounds = array<i64: 4, 4>}, {pipeline_mode = #tpu.pipeline_mode<synchronous>, transform_indices = @transform_3, window_bounds = array<i64: 1, 4>}, {transform_indices = @transform_4, window_bounds = array<i64: 1, 16, 128>}]} {
    %c0 = arith.constant 0 : index
    %c0_0 = arith.constant 0 : index
    %c0_1 = arith.constant 0 : index
    %0 = vector.load %arg3[%c0, %c0_0, %c0_1] : memref<1x16x4xf32, #tpu.memory_space<vmem>>, vector<1x16x4xf32>
    %1 = vector.shape_cast %0 : vector<1x16x4xf32> to vector<16x4xf32>
    %2 = arith.truncf %1 : vector<16x4xf32> to vector<16x4xbf16>
    %c0_2 = arith.constant 0 : index
    %c0_3 = arith.constant 0 : index
    %3 = vector.load %arg4[%c0_2, %c0_3] : memref<4x4xbf16, #tpu.memory_space<vmem>>, vector<4x4xbf16>
    %cst = arith.constant dense<0.000000e+00> : vector<16x4xf32>
    %4 = tpu.matmul %2, %3, %cst {dimension_numbers = #tpu.dot_dimension_numbers<[1], [0], [0], [1], [0, 0, 1, 1], [], []>} : vector<16x4xbf16>, vector<4x4xbf16>, vector<16x4xf32> -> vector<16x4xf32>
    %c0_4 = arith.constant 0 : index
    %c0_5 = arith.constant 0 : index
    %5 = vector.load %arg5[%c0_4, %c0_5] : memref<1x4xf32, #tpu.memory_space<vmem>>, vector<1x4xf32>
    %6 = vector.broadcast %5 : vector<1x4xf32> to vector<16x4xf32>
    %7 = arith.addf %4, %6 : vector<16x4xf32>
    %cst_6 = arith.constant 0.000000e+00 : f32
    %8 = vector.broadcast %cst_6 : f32 to vector<16x4xf32>
    %9 = arith.maximumf %7, %8 : vector<16x4xf32>
    %c0_7 = arith.constant 0 : index
    %c0_8 = arith.constant 0 : index
    %c0_9 = arith.constant 0 : index
    %10 = vector.load %arg2[%c0_7, %c0_8, %c0_9] : memref<1x16x3xf32, #tpu.memory_space<vmem>>, vector<1x16x3xf32>
    %11 = vector.shape_cast %10 : vector<1x16x3xf32> to vector<16x3xf32>
    %cst_10 = arith.constant 0.000000e+00 : f32
    %12 = vector.broadcast %cst_10 : f32 to vector<16x121xf32>
    %13 = tpu.concatenate %11, %9, %12 in 1 : vector<16x3xf32>, vector<16x4xf32>, vector<16x121xf32> -> vector<16x128xf32>
    %c0_11 = arith.constant 0 : index
    %c0_12 = arith.constant 0 : index
    %c0_13 = arith.constant 0 : index
    %14 = vector.load %arg6[%c0_11, %c0_12, %c0_13] : memref<1x16x128xf32, #tpu.memory_space<vmem>>, vector<1x16x128xf32>
    %15 = vector.shape_cast %14 : vector<1x16x128xf32> to vector<16x128xf32>
    %16 = vector.shape_cast %13 : vector<16x128xf32> to vector<1x16x128xf32>
    tpu.vector_store %arg6[%c0_11, %c0_12, %c0_13], %16 {strides = array<i32>} : memref<1x16x128xf32, #tpu.memory_space<vmem>>, vector<1x16x128xf32>,
    return
  }
  func.func @transform_0(%arg0: i32, %arg1: i32) -> (i32, i32, i32) {
    %c0_i32 = arith.constant 0 : i32
    %c0_i32_0 = arith.constant 0 : i32
    return %arg0, %arg1, %c0_i32 : i32, i32, i32
  }
  func.func @transform_1(%arg0: i32, %arg1: i32) -> (i32, i32, i32) {
    %c0_i32 = arith.constant 0 : i32
    %c0_i32_0 = arith.constant 0 : i32
    return %arg0, %arg1, %c0_i32 : i32, i32, i32
  }
  func.func @transform_2(%arg0: i32, %arg1: i32) -> (i32, i32) {
    %c0_i32 = arith.constant 0 : i32
    %c0_i32_0 = arith.constant 0 : i32
    %c0_i32_1 = arith.constant 0 : i32
    return %c0_i32, %c0_i32_0 : i32, i32
  }
  func.func @transform_3(%arg0: i32, %arg1: i32) -> (i32, i32) {
    %c0_i32 = arith.constant 0 : i32
    %c0_i32_0 = arith.constant 0 : i32
    %c0_i32_1 = arith.constant 0 : i32
    return %c0_i32, %c0_i32_0 : i32, i32
  }
  func.func @transform_4(%arg0: i32, %arg1: i32) -> (i32, i32, i32) {
    %c0_i32 = arith.constant 0 : i32
    %c0_i32_0 = arith.constant 0 : i32
    return %arg0, %arg1, %c0_i32 : i32, i32, i32
  }
}

</mosaic_0001>

<bundles_post_ra>
// kernel: tpu_custom_call.1
= control target key start
LH: loop header
LB: loop body
LE: loop exit
PB: predicated region body
PF: predicated region fallthrough
CT: control target
= control target key end

     0   :  { %9 = vsyncpa [#allocation3], 0  ;;  %s777_s0 = inlined_call_operand.vmem [shape: f32[2,16,3], index: 0, kind: input, shape index: {}]   ;;  %s778_s1 = inlined_call_operand.vmem [shape: f32[2,16,4], index: 1, kind: input, shape index: {}]   ;;  %s779_s2 = inlined_call_operand.vmem [shape: bf16[4,4], index: 2, kind: input, shape index: {}]   ;;  %s780_s3 = inlined_call_operand.vmem [shape: f32[1,4], index: 3, kind: input, shape index: {}]   ;;  %s781_s4 = inlined_call_operand.hbm [shape: f32[2,16,128], index: 4, kind: output, shape index: {}]  }
   0x1   :  { %11 = vsyncpa [#allocation3 + $0x1], 0  ;;  %s654_s15 = smov 0   ;;  %s656_s16 = smov 0  }
   0x2   :  { %s658_s17 = smov 0   ;;  %s660_s18 = smov 0  }
   0x3   :  { %s662_s19 = smov 0   ;;  %s664_s20 = smov 0  }
   0x4 LB: > { %s457_s21 = sadd.s32 4294967295, %s621_s20   ;;  %s458_s22 = sadd.s32 4294967294, %s621_s20   ;;  %s621_s20 = sphi %s664_s20, %s17_s20   ;;  %s617_s19 = sphi %s662_s19, %s788_s19   ;;  %s613_s18 = sphi %s660_s18, %s787_s18   ;;  %s609_s17 = sphi %s658_s17, %s786_s17   ;;  %s605_s16 = sphi %s656_s16, %s785_s16   ;;  %s601_s15 = sphi %s654_s15, %s784_s15  }
   0x5   : > { %s29_s23 = sadd.s32 1, %s617_s19  ;;  %s136_s24 = sadd.s32 1, %s609_s17 }
   0x6   : > { %p31_p0 = scmp.ge.s32.totalorder %s29_s23, 2  ;;  %p146_p1 = scmp.ne.s32.totalorder %s609_s17, %s605_s16 }
   0x7   : > { %p147_p2 = scmp.eq.s32.totalorder %s457_s21, 1  ;;  %p152_p3 = scmp.ne.s32.totalorder %s605_s16, %s601_s15 }
   0x8   : > { %s790_s23 = smov (%p31_p0, %s29_s23), 0  ;;  %p153_p5 = scmp.eq.s32.totalorder %s458_s22, 1 }
   0x9   : > { %p694_p4 = por %p147_p2, %p146_p1  ;;  %s131_s26 = ssub.s32 %s617_s19, %s790_s23 }
   0xa   : > { %p461_p6 = scmp.ge.s32.totalorder %s621_s20, 1  ;;  %p134_p7 = scmp.eq.s32.totalorder %s131_s26, 0 }
   0xb   : > { %p701_p8 = por %p153_p5, %p152_p3  ;;  %p203_p9 = scmp.lt.s32.totalorder %s621_s20, 3 }
   0xc   : > { %s707_s28 = scalar_select %p134_p7, %s609_s17, %s136_s24  }
   0xd   : > { %p204_p10 = pnand %p461_p6, %p203_p9 }
   0xe   : > { %p243_p11 = scmp.lt.s32.totalorder (!%p204_p10), %s613_s18, 1  ;;  %s625_s12 = smov (!%p204_p10), 3  }
   0xf   : > { %207 = sbr.rel (%p204_p10) target bundleno = 359 (0x167), region = 36  ;;  %s239_s13 = sand.u32 (!%p204_p10), 1, %s605_s16  }
  0x10   : > { %s462_s24 = sshll.u32 (!%p204_p10), %s239_s13, 4  ;;  %s476_s30 = sshll.u32 (!%p204_p10), %s613_s18, 8 }
  0x11   : > { %s241_s26 = scalar_lea.vmem (!%p204_p10), [#allocation2], %s462_s24  ;;  %s730_s7 = scalar_lea.hbm (!%p204_p10), %s781_s4, %s476_s30 }
  0x12   : > { %s360_s29 = sshll.u32 (!%p204_p10), %s241_s26, 4  ;;  %s732_s8 = scalar_lea.sflag (!%p204_p10), [#allocation3], %s239_s13  ;;  %s725_s29 = int_to_ptr.vmem [resolvable:$true] %s360_s29 }
  0x14   : > { %v267_v0 = vld [vmem:[%s779_s2] sm:$0x3]  ;;  %vm279_vm0 = vcmask 1041408   ;;  %v623_v1 = vmov 0.0   ;;  %vm624_vm1 = vmmov 0   ;;  %s244_s5 = scalar_select %p243_p11, %s613_s18, 1 }
  0x15   : > { %479 = vmatprep.subr.bf16.mxu0 %v623_v1  ;;  %v281_v2 = vsel %vm279_vm0, %v267_v0, 0  ;;  %481 = vmatprep.mubr.msk.bf16.mxu0 %vm624_vm1, %v623_v1  ;;  %vm275_vm2 = vcmask 31744   ;;  %v467_v6 = vld [vmem:[%s780_s3] ss:$0 sm:$0xff]  ;;  %vm336_vm3 = vcmask 23552   ;;  %vm339_vm4 = vcmask 56320  }
  0x16   : > { %480 = vmatpush3.bf16.msra.mxu0 %v281_v2  ;;  %s474_s6 = sshll.u32 %s244_s5, 4  ;;  %s545_s18 = scalar_lea.vmem %s725_s29, 256 }
  0x17   : > { %s260_s9 = scalar_lea.vmem %s778_s1, %s474_s6  ;;  %s250_s22 = scalar_lea.vmem %s777_s0, %s474_s6 }
  0x18   : > { %v264_v3 = vld [vmem:[%s260_s9] sm:$0xff]  ;;  %v265_v4 = vld [vmem:[%s260_s9 + $0x8] sm:$0xff]  ;;  %p546_p12 = scmp.ne.s32.totalorder %s725_s29, %s545_s18  ;;  %s626_s9 = smov [#allocation2]  }
  0x19   : > { %v266_v5 = vpack.c.bf16 %v265_v4, %v264_v3  ;;  %v326_v15 = vld [vmem:[%s250_s22] sm:$0xff]  ;;  %v327_v19 = vld [vmem:[%s250_s22 + $0x8] sm:$0xff]  ;;  %s549_s10 = sshll.u32 %s626_s9, 4  ;;  %s550_s10 = int_to_ptr.vmem [resolvable:$false] %s549_s10 }
  0x1a   : > { %p547_p13 = pnand %p546_p12, %p694_p4  ;;  %s551_s11 = scalar_lea.vmem %s550_s10, 512 }
  0x1b   : > { %482 = vmatmul.mubr.msk.bf16.vlgmr.msra.gmra.mxu0 %vm275_vm2, %v266_v5  ;;  %p552_p1 = scmp.lt.s32.totalorder %s725_s29, %s550_s10  ;;  %p553_p2 = scmp.lt.s32.totalorder %s551_s11, %s545_s18 }
  0x1c   : > { %p548_p0 = pneg %p547_p13 }
  0x1d   : > { %p554_p3 = por %p553_p2, %p552_p1 }
  0x1f   : > { %p555_p5 = pnand %p554_p3, %p548_p0 }
  0xdb   : > { %v317_v7 = vpop.f32.mrf.mxu0 }
  0xdc   : > { %v318_v8 = vadd.f32 %v467_v6, %v317_v7 }
  0xdd   : > { %v483_v9 = vpop.f32.mrf.mxu0 }
  0xde   : > { %v324_v10 = vmax.f32 %v318_v8, 0.0 }
  0xdf   : > { %v320_v11 = vpop.f32.mrf.mxu0 }
  0xe0   : > { %v321_v12 = vadd.f32 %v467_v6, %v320_v11  ;;  %330 = vrot.lane.b32.xlu0 %v324_v10, %s625_s12 }
  0xe1   : > { %v484_v13 = vpop.f32.mrf.mxu0 }
  0xe2   : > { %v325_v14 = vmax.f32 %v321_v12, 0.0 }
  0xe4   : > { %332 = vrot.lane.b32.xlu0 %v325_v14, %s625_s12 }
 0x152   : > { %v331_v16 = vpop.permute.xlu0 %330 }
 0x153   : > { %v337_v17 = vsel %vm336_vm3, %v326_v15, %v331_v16 }
 0x154   : > { %v340_v18 = vsel %vm339_vm4, %v337_v17, 0.0 }
 0x155   : > { %342 = vst [vmem:[%s241_s26] sm:$0xff] %v340_v18 }
 0x156   : > { %v333_v20 = vpop.permute.xlu0 %332 }
 0x157   : > { %v338_v21 = vsel %vm336_vm3, %v327_v19, %v333_v20 }
 0x158   : > { %v341_v22 = vsel %vm339_vm4, %v338_v21, 0.0 }
 0x159   : > { %343 = vst [vmem:[%s241_s26 + $0x8] sm:$0xff] %v341_v22 }
 0x15a   : > { %558 = shalt.err (!%p555_p5)
}
 0x15b   : > { %s559_s12 = scalar_lea.hbm %s730_s7, 256  ;;  %s563_s21 = scalar_lea.hbm %s781_s4, 512 }
 0x15c   : > { %p560_p6 = scmp.ne.s32.totalorder %s730_s7, %s559_s12  ;;  %p564_p10 = scmp.lt.s32.totalorder %s730_s7, %s781_s4 }
 0x15d   : > { %p565_p11 = scmp.lt.s32.totalorder %s563_s21, %s559_s12 }
 0x15e   : > { %p561_p7 = pnand %p560_p6, %p694_p4 }
 0x15f   : > { %p566_p12 = por %p565_p11, %p564_p10 }
 0x160   : > { %p562_p9 = pneg %p561_p7 }
 0x162   : > { %p567_p13 = pnand %p566_p12, %p562_p9 }
 0x164   : > { %570 = shalt.err (!%p567_p13)
}
 0x165   : > { %s627_s26 = smov 128   ;;  %s628_s30 = smov 8  }
 0x166   : > { %485 = dma.vmem_to_hbm [thread:$0]  (%p694_p4), %s725_s29, 256, %s730_s7, %s732_s8, %s627_s26, %s627_s26, %s628_s30  }
 0x167 PF: > { %p491_p0 = scmp.ge.s32.totalorder %s621_s20, 2  ;;  %s375_s5 = sand.u32 1, %s601_s15  }
 0x168   : > { %s376_s6 = scalar_lea.sflag [#allocation3], %s375_s5 }
 0x169   : > { %p488_p1 = pnand %p491_p0, %p701_p8 }
 0x16b   : > { %p489_p2 = pneg %p488_p1 }
 0x16d   : > { %596 = dma.done.wait (%p489_p2), %s376_s6, 256  }
 0x16e   : > { %598 = vsyncadd (%p489_p2), %s376_s6, 4294967040  ;;  %s17_s20 = sadd.s32 1, %s621_s20   ;;  %s784_s15 = smov %s605_s16 }
 0x16f   : > { %p14_p3 = scmp.ge.s32.totalorder %s17_s20, 4   ;;  %s785_s16 = smov %s609_s17 }
 0x170   : > { %s786_s17 = smov %s707_s28  ;;  %s787_s18 = smov %s617_s19 }
 0x171   : > { %s788_s19 = smov %s790_s23  ;;  %16 = sbr.rel (!%p14_p3) target bundleno = 4 (0x4), region = 74 }
 0x176   :  { %381 = vsyncpa [#allocation3], 1 }
 0x177   :  { %383 = vsyncpa [#allocation3 + $0x1], 1 }

// kernel: tpu_custom_call.1
= control target key start
LH: loop header
LB: loop body
LE: loop exit
PB: predicated region body
PF: predicated region fallthrough
CT: control target
= control target key end

     0   :  { %9 = vsyncpa [#allocation3], 0  ;;  %s777_s0 = inlined_call_operand.vmem [shape: f32[2,16,3], index: 0, kind: input, shape index: {}]   ;;  %s778_s1 = inlined_call_operand.vmem [shape: f32[2,16,4], index: 1, kind: input, shape index: {}]   ;;  %s779_s2 = inlined_call_operand.vmem [shape: bf16[4,4], index: 2, kind: input, shape index: {}]   ;;  %s780_s3 = inlined_call_operand.vmem [shape: f32[1,4], index: 3, kind: input, shape index: {}]   ;;  %s781_s4 = inlined_call_operand.hbm [shape: f32[2,16,128], index: 4, kind: output, shape index: {}]  }
   0x1   :  { %11 = vsyncpa [#allocation3 + $0x1], 0  ;;  %s654_s15 = smov 0   ;;  %s656_s16 = smov 0  }
   0x2   :  { %s658_s17 = smov 0   ;;  %s660_s18 = smov 0  }
   0x3   :  { %s662_s19 = smov 0   ;;  %s664_s20 = smov 0  }
   0x4 LB: > { %s457_s21 = sadd.s32 4294967295, %s621_s20   ;;  %s458_s22 = sadd.s32 4294967294, %s621_s20   ;;  %s621_s20 = sphi %s664_s20, %s17_s20   ;;  %s617_s19 = sphi %s662_s19, %s788_s19   ;;  %s613_s18 = sphi %s660_s18, %s787_s18   ;;  %s609_s17 = sphi %s658_s17, %s786_s17   ;;  %s605_s16 = sphi %s656_s16, %s785_s16   ;;  %s601_s15 = sphi %s654_s15, %s784_s15  }
   0x5   : > { %s29_s23 = sadd.s32 1, %s617_s19  ;;  %s136_s24 = sadd.s32 1, %s609_s17 }
   0x6   : > { %p31_p0 = scmp.ge.s32.totalorder %s29_s23, 2  ;;  %p146_p1 = scmp.ne.s32.totalorder %s609_s17, %s605_s16 }
   0x7   : > { %p147_p2 = scmp.eq.s32.totalorder %s457_s21, 1  ;;  %p152_p3 = scmp.ne.s32.totalorder %s605_s16, %s601_s15 }
   0x8   : > { %s790_s23 = smov (%p31_p0, %s29_s23), 0  ;;  %p153_p5 = scmp.eq.s32.totalorder %s458_s22, 1 }
   0x9   : > { %p694_p4 = por %p147_p2, %p146_p1  ;;  %s131_s26 = ssub.s32 %s617_s19, %s790_s23 }
   0xa   : > { %p461_p6 = scmp.ge.s32.totalorder %s621_s20, 1  ;;  %p134_p7 = scmp.eq.s32.totalorder %s131_s26, 0 }
   0xb   : > { %p701_p8 = por %p153_p5, %p152_p3  ;;  %p203_p9 = scmp.lt.s32.totalorder %s621_s20, 3 }
   0xc   : > { %s707_s28 = scalar_select %p134_p7, %s609_s17, %s136_s24  }
   0xd   : > { %p204_p10 = pnand %p461_p6, %p203_p9 }
   0xe   : > { %p243_p11 = scmp.lt.s32.totalorder (!%p204_p10), %s613_s18, 1  ;;  %s625_s12 = smov (!%p204_p10), 3  }
   0xf   : > { %207 = sbr.rel (%p204_p10) target bundleno = 359 (0x167), region = 36  ;;  %s239_s13 = sand.u32 (!%p204_p10), 1, %s605_s16  }
  0x10   : > { %s462_s24 = sshll.u32 (!%p204_p10), %s239_s13, 4  ;;  %s476_s30 = sshll.u32 (!%p204_p10), %s613_s18, 8 }
  0x11   : > { %s241_s26 = scalar_lea.vmem (!%p204_p10), [#allocation2], %s462_s24  ;;  %s730_s7 = scalar_lea.hbm (!%p204_p10), %s781_s4, %s476_s30 }
  0x12   : > { %s360_s29 = sshll.u32 (!%p204_p10), %s241_s26, 4  ;;  %s732_s8 = scalar_lea.sflag (!%p204_p10), [#allocation3], %s239_s13  ;;  %s725_s29 = int_to_ptr.vmem [resolvable:$true] %s360_s29 }
  0x14   : > { %v267_v0 = vld [vmem:[%s779_s2] sm:$0x3]  ;;  %vm279_vm0 = vcmask 1041408   ;;  %v623_v1 = vmov 0.0   ;;  %vm624_vm1 = vmmov 0   ;;  %s244_s5 = scalar_select %p243_p11, %s613_s18, 1 }
  0x15   : > { %479 = vmatprep.subr.bf16.mxu0 %v623_v1  ;;  %v281_v2 = vsel %vm279_vm0, %v267_v0, 0  ;;  %481 = vmatprep.mubr.msk.bf16.mxu0 %vm624_vm1, %v623_v1  ;;  %vm275_vm2 = vcmask 31744   ;;  %v467_v6 = vld [vmem:[%s780_s3] ss:$0 sm:$0xff]  ;;  %vm336_vm3 = vcmask 23552   ;;  %vm339_vm4 = vcmask 56320  }
  0x16   : > { %480 = vmatpush3.bf16.msra.mxu0 %v281_v2  ;;  %s474_s6 = sshll.u32 %s244_s5, 4  ;;  %s545_s18 = scalar_lea.vmem %s725_s29, 256 }
  0x17   : > { %s260_s9 = scalar_lea.vmem %s778_s1, %s474_s6  ;;  %s250_s22 = scalar_lea.vmem %s777_s0, %s474_s6 }
  0x18   : > { %v264_v3 = vld [vmem:[%s260_s9] sm:$0xff]  ;;  %v265_v4 = vld [vmem:[%s260_s9 + $0x8] sm:$0xff]  ;;  %p546_p12 = scmp.ne.s32.totalorder %s725_s29, %s545_s18  ;;  %s626_s9 = smov [#allocation2]  }
  0x19   : > { %v266_v5 = vpack.c.bf16 %v265_v4, %v264_v3  ;;  %v326_v15 = vld [vmem:[%s250_s22] sm:$0xff]  ;;  %v327_v19 = vld [vmem:[%s250_s22 + $0x8] sm:$0xff]  ;;  %s549_s10 = sshll.u32 %s626_s9, 4  ;;  %s550_s10 = int_to_ptr.vmem [resolvable:$false] %s549_s10 }
  0x1a   : > { %p547_p13 = pnand %p546_p12, %p694_p4  ;;  %s551_s11 = scalar_lea.vmem %s550_s10, 512 }
  0x1b   : > { %482 = vmatmul.mubr.msk.bf16.vlgmr.msra.gmra.mxu0 %vm275_vm2, %v266_v5  ;;  %p552_p1 = scmp.lt.s32.totalorder %s725_s29, %s550_s10  ;;  %p553_p2 = scmp.lt.s32.totalorder %s551_s11, %s545_s18 }
  0x1c   : > { %p548_p0 = pneg %p547_p13 }
  0x1d   : > { %p554_p3 = por %p553_p2, %p552_p1 }
  0x1f   : > { %p555_p5 = pnand %p554_p3, %p548_p0 }
  0xdb   : > { %v317_v7 = vpop.f32.mrf.mxu0 }
  0xdc   : > { %v318_v8 = vadd.f32 %v467_v6, %v317_v7 }
  0xdd   : > { %v483_v9 = vpop.f32.mrf.mxu0 }
  0xde   : > { %v324_v10 = vmax.f32 %v318_v8, 0.0 }
  0xdf   : > { %v320_v11 = vpop.f32.mrf.mxu0 }
  0xe0   : > { %v321_v12 = vadd.f32 %v467_v6, %v320_v11  ;;  %330 = vrot.lane.b32.xlu0 %v324_v10, %s625_s12 }
  0xe1   : > { %v484_v13 = vpop.f32.mrf.mxu0 }
  0xe2   : > { %v325_v14 = vmax.f32 %v321_v12, 0.0 }
  0xe4   : > { %332 = vrot.lane.b32.xlu0 %v325_v14, %s625_s12 }
 0x152   : > { %v331_v16 = vpop.permute.xlu0 %330 }
 0x153   : > { %v337_v17 = vsel %vm336_vm3, %v326_v15, %v331_v16 }
 0x154   : > { %v340_v18 = vsel %vm339_vm4, %v337_v17, 0.0 }
 0x155   : > { %342 = vst [vmem:[%s241_s26] sm:$0xff] %v340_v18 }
 0x156   : > { %v333_v20 = vpop.permute.xlu0 %332 }
 0x157   : > { %v338_v21 = vsel %vm336_vm3, %v327_v19, %v333_v20 }
 0x158   : > { %v341_v22 = vsel %vm339_vm4, %v338_v21, 0.0 }
 0x159   : > { %343 = vst [vmem:[%s241_s26 + $0x8] sm:$0xff] %v341_v22 }
 0x15a   : > { %558 = shalt.err (!%p555_p5)
}
 0x15b   : > { %s559_s12 = scalar_lea.hbm %s730_s7, 256  ;;  %s563_s21 = scalar_lea.hbm %s781_s4, 512 }
 0x15c   : > { %p560_p6 = scmp.ne.s32.totalorder %s730_s7, %s559_s12  ;;  %p564_p10 = scmp.lt.s32.totalorder %s730_s7, %s781_s4 }
 0x15d   : > { %p565_p11 = scmp.lt.s32.totalorder %s563_s21, %s559_s12 }
 0x15e   : > { %p561_p7 = pnand %p560_p6, %p694_p4 }
 0x15f   : > { %p566_p12 = por %p565_p11, %p564_p10 }
 0x160   : > { %p562_p9 = pneg %p561_p7 }
 0x162   : > { %p567_p13 = pnand %p566_p12, %p562_p9 }
 0x164   : > { %570 = shalt.err (!%p567_p13)
}
 0x165   : > { %s627_s26 = smov 128   ;;  %s628_s30 = smov 8  }
 0x166   : > { %485 = dma.vmem_to_hbm [thread:$0]  (%p694_p4), %s725_s29, 256, %s730_s7, %s732_s8, %s627_s26, %s627_s26, %s628_s30  }
 0x167 PF: > { %p491_p0 = scmp.ge.s32.totalorder %s621_s20, 2  ;;  %s375_s5 = sand.u32 1, %s601_s15  }
 0x168   : > { %s376_s6 = scalar_lea.sflag [#allocation3], %s375_s5 }
 0x169   : > { %p488_p1 = pnand %p491_p0, %p701_p8 }
 0x16b   : > { %p489_p2 = pneg %p488_p1 }
 0x16d   : > { %596 = dma.done.wait (%p489_p2), %s376_s6, 256  }
 0x16e   : > { %598 = vsyncadd (%p489_p2), %s376_s6, 4294967040  ;;  %s17_s20 = sadd.s32 1, %s621_s20   ;;  %s784_s15 = smov %s605_s16 }
 0x16f   : > { %p14_p3 = scmp.ge.s32.totalorder %s17_s20, 4   ;;  %s785_s16 = smov %s609_s17 }
 0x170   : > { %s786_s17 = smov %s707_s28  ;;  %s787_s18 = smov %s617_s19 }
 0x171   : > { %s788_s19 = smov %s790_s23  ;;  %16 = sbr.rel (!%p14_p3) target bundleno = 4 (0x4), region = 74 }
 0x176   :  { %381 = vsyncpa [#allocation3], 1 }
 0x177   :  { %383 = vsyncpa [#allocation3 + $0x1], 1 }

</bundles_post_ra>
